<compile_context>
chip_gen: v5e
topology: v5e:2x2
jax: 0.10.0
libtpu: 0.0.40
codegen_flags: <defaults>
</compile_context>

<pallas_src>
import functools

import jax
import jax.numpy as jnp
from jax import lax
from jax.experimental import pallas as pl
from jax.experimental.pallas import tpu as pltpu


# ----------------------------------------------------------------------------
# Dropout randomness
# ----------------------------------------------------------------------------
_HW_PRNG_CACHE = {"ok": None}


def _hw_prng_available():
    """Probe once whether the hardware-PRNG path lowers & runs in this environment."""
    if _HW_PRNG_CACHE["ok"] is None:
        def _probe(o_ref):
            pltpu.prng_seed(12345, 678)
            o_ref[...] = pltpu.bitcast(pltpu.prng_random_bits((8, 128)), jnp.int32)

        try:
            jax.block_until_ready(
                pl.pallas_call(
                    _probe,
                    out_shape=jax.ShapeDtypeStruct((8, 128), jnp.int32),
                )()
            )
            _HW_PRNG_CACHE["ok"] = True
        except Exception:
            _HW_PRNG_CACHE["ok"] = False
    return _HW_PRNG_CACHE["ok"]


def _hash_uniform_bits(shape, seed_scalar, row_offset):
    """Stateless per-element uint32 (murmur3 finalizer).

    Fallback only (used when the hardware PRNG does not lower, e.g. interpret
    mode).  Deterministic in (seed, global element index); unique while the
    total element count < 2^32.
    """
    lin = lax.broadcasted_iota(jnp.int32, shape, 0) + row_offset
    for ax in range(1, len(shape)):
        lin = lin * jnp.int32(shape[ax]) + lax.broadcasted_iota(jnp.int32, shape, ax)
    v = (lin + seed_scalar * jnp.int32(-1640531535)).astype(jnp.uint32)  # 0x9E3779B1
    v = v ^ (v >> 16)
    v = v * jnp.uint32(0x7FEB352D)
    v = v ^ (v >> 15)
    v = v * jnp.uint32(0x846CA68B)
    v = v ^ (v >> 16)
    return v


# ----------------------------------------------------------------------------
# Kernel
# ----------------------------------------------------------------------------
def _pe_dropout_kernel(seed_ref, x_ref, pe_ref, o_ref, *, p, batch, folded, use_hw_prng):
    """
    seed_ref : SMEM (1,) int32
    x_ref    : VMEM (TS, B*D)   [folded]  or (TS, B, D)
    pe_ref   : VMEM (TS, D)     [folded]  or (TS, 1, D)
    o_ref    : same shape as x_ref
    """
    x = x_ref[...]
    pe = pe_ref[...]
    if folded and batch > 1:
        # (TS, D) -> (TS, B*D): repeat along lanes; matches the row-major fold of (B, D).
        pe = jnp.concatenate([pe] * batch, axis=-1)
    y = x + pe                                   # dtype-native add (bf16 stays bf16)

    if p >= 1.0:                                 # static branch: everything dropped
        y = jnp.zeros_like(y)
    elif p > 0.0:
        if use_hw_prng:
            # Hardware PRNG is ~free next to HBM traffic.  Re-seed per grid tile so
            # masks are independent across tiles (and across megacore shards).
            pltpu.prng_seed(seed_ref[0], pl.program_id(0))
            bits = pltpu.bitcast(pltpu.prng_random_bits(y.shape), jnp.uint32)
        else:
            row_off = pl.program_id(0) * x_ref.shape[0]
            bits = _hash_uniform_bits(y.shape, seed_ref[0], row_off)
        threshold = jnp.uint32(min(int(round(p * 2.0 ** 32)), 2 ** 32 - 1))
        keep = bits >= threshold                 # P(keep) = 1 - p (2^-32 quantization)
        # TODO(synk): for exact torch parity at low precision, apply 1/(1-p) in f32
        # and cast on the final store (bf16 scale carries ~0.1-0.4% bias).
        scale = jnp.asarray(1.0 / (1.0 - p), dtype=y.dtype)
        y = jnp.where(keep, y * scale, jnp.zeros_like(y))

    o_ref[...] = y


# ----------------------------------------------------------------------------
# Wrapper
# ----------------------------------------------------------------------------
def make_pe_table(d_model, max_len=5000, dtype=jnp.float32):
    """Deterministic sinusoidal table, identical to the torch __init__ math."""
    position = jnp.arange(max_len, dtype=jnp.float32)[:, None]                  # (L, 1)
    div_term = jnp.exp(
        jnp.arange(0, d_model, 2, dtype=jnp.float32)
        * (-jnp.log(jnp.float32(10000.0)) / d_model))                           # (D/2,)
    pe = jnp.zeros((max_len, d_model), dtype=jnp.float32)
    pe = pe.at[:, 0::2].set(jnp.sin(position * div_term))
    pe = pe.at[:, 1::2].set(jnp.cos(position * div_term))
    return pe.astype(dtype)                                                     # (L, D)


def _choose_block_s(S, row_bytes, align, target_bytes=6 * 1024 * 1024):
    """Seq-tile size: ~6 MiB of x per tile (double-buffered in+out stays under the
    48 MiB VMEM limit on every generation incl. v7x), aligned to sublane packing."""
    rows = max(align, target_bytes // max(1, row_bytes))
    bs = min(S, int(rows))
    if bs < S:
        bs = max(align, (bs // align) * align)
    elif S >= 2 * align:
        # Whole sequence would be a single grid step; split in two so the
        # "parallel" seq axis can actually occupy both v7x TensorCores.
        bs = -(-((S + 1) // 2) // align) * align
        bs = min(bs, S)
    return int(bs)


def positional_encoding_forward(x, pe_table, *, p=0.1, training=True, seed=0,
                                use_hw_prng=None):
    """dropout(x + pe[:seq_len], p) with x: (seq_len, batch, d_model)."""
    S, B, D = x.shape
    dtype = x.dtype
    itemsize = jnp.dtype(dtype).itemsize
    p_eff = float(p) if training else 0.0

    if p_eff <= 0.0:
        use_hw_prng = False                      # dropout branch not emitted; skip probe
    elif use_hw_prng is None:
        use_hw_prng = _hw_prng_available()

    pe_slice = pe_table[:S].astype(dtype)        # pre-cast: halves pe DMA bytes for bf16
    seed_arr = jnp.asarray([seed], dtype=jnp.int32)

    sub_align = max(8, (8 * 4) // itemsize)      # sublane packing: 8 f32 / 16 bf16 / 32 i8
    folded = B < sub_align                       # narrow batch -> lane-dense 2D layout
    row_bytes = B * D * itemsize
    block_s = _choose_block_s(S, row_bytes, sub_align)
    grid = (pl.cdiv(S, block_s),)

    kernel = functools.partial(_pe_dropout_kernel, p=p_eff, batch=B,
                               folded=folded, use_hw_prng=use_hw_prng)

    if folded:
        x_in = x.reshape(S, B * D)                                   # contiguous -> free
        pe_in = pe_slice                                             # (S, D), tiled over B in-kernel
        x_spec = pl.BlockSpec((block_s, B * D), lambda i: (i, 0))
        pe_spec = pl.BlockSpec((block_s, D), lambda i: (i, 0))
        out_shape = jax.ShapeDtypeStruct((S, B * D), dtype)
        out_spec = pl.BlockSpec((block_s, B * D), lambda i: (i, 0))
    else:
        x_in = x
        pe_in = pe_slice[:, None, :]                                 # (S, 1, D)
        x_spec = pl.BlockSpec((block_s, B, D), lambda i: (i, 0, 0))
        pe_spec = pl.BlockSpec((block_s, 1, D), lambda i: (i, 0, 0))
        out_shape = jax.ShapeDtypeStruct((S, B, D), dtype)
        out_spec = pl.BlockSpec((block_s, B, D), lambda i: (i, 0, 0))

    cost = pl.CostEstimate(
        flops=2 * S * B * D,
        transcendentals=0,
        bytes_accessed=(2 * S * B * D + S * D) * itemsize,
    )

    out = pl.pallas_call(
        kernel,
        out_shape=out_shape,
        grid=grid,
        in_specs=[
            pl.BlockSpec(memory_space=pltpu.MemorySpace.SMEM),       # seed scalar
            x_spec,
            pe_spec,
        ],
        out_specs=out_spec,
        compiler_params=pltpu.CompilerParams(
            dimension_semantics=("parallel",),    # shard seq tiles across v7x's 2 TCs
            vmem_limit_bytes=48 * 1024 * 1024,    # > v5e 16 MiB default, < v7x 64 MiB physical
        ),
        cost_estimate=cost,
    )(seed_arr, x_in, pe_in)

    return out.reshape(S, B, D) if folded else out


# ----------------------------------------------------------------------------
# Self-test
# ----------------------------------------------------------------------------
if __name__ == "__main__":
    d_model = 32
    max_len = 64
    seq_len = 8
    batch = 2

    key = jax.random.PRNGKey(0)
    x = jax.random.normal(key, (seq_len, batch, d_model), dtype=jnp.float32)
    pe_table = make_pe_table(d_model, max_len=max_len)

    ref = x + pe_table[:seq_len][:, None, :]

    # Eval mode (dropout = identity): must match the pure-JAX reference exactly.
    out_eval = jax.block_until_ready(
        positional_encoding_forward(x, pe_table, p=0.1, training=False))
    assert out_eval.shape == x.shape and out_eval.dtype == x.dtype
    assert jnp.allclose(out_eval, ref, atol=1e-6, rtol=1e-6)

    # Training mode: kept elements equal ref / (1 - p); dropped elements are 0.
    p = 0.1
    out_train = jax.block_until_ready(
        positional_encoding_forward(x, pe_table, p=p, training=True, seed=1234))
    assert out_train.shape == x.shape and out_train.dtype == x.dtype
    kept = out_train != 0.0
    expected = ref * jnp.float32(1.0 / (1.0 - p))
    assert jnp.allclose(jnp.where(kept, out_train, 0.0),
                        jnp.where(kept, expected, 0.0),
                        atol=1e-5, rtol=1e-5)
    drop_frac = float(1.0 - jnp.mean(kept.astype(jnp.float32)))
    assert 0.0 < drop_frac < 0.35, f"unexpected drop fraction {drop_frac}"

    print("KERNEL_OK")
</pallas_src>

<mosaic_0001>
module attributes {stable_mosaic.version = 11 : i64} {
  func.func @_pe_dropout_kernel(%arg0: i32, %arg1: memref<1xi32, #tpu.memory_space<smem>>, %arg2: memref<8x64xf32, #tpu.memory_space<vmem>>, %arg3: memref<8x32xf32, #tpu.memory_space<vmem>>, %arg4: memref<8x64xf32, #tpu.memory_space<vmem>>) attributes {dimension_semantics = [#tpu.dimension_semantics<parallel>], iteration_bounds = array<i64: 1>, scalar_prefetch = 0 : i64, scratch_operands = 0 : i64, tpu.core_type = #tpu.core_type<tc>, window_params = [{transform_indices = @transform_0, window_bounds = array<i64: 1>}, {transform_indices = @transform_1, window_bounds = array<i64: 8, 64>}, {transform_indices = @transform_2, window_bounds = array<i64: 8, 32>}, {transform_indices = @transform_3, window_bounds = array<i64: 8, 64>}]} {
    %c0 = arith.constant 0 : index
    %c0_0 = arith.constant 0 : index
    %0 = vector.load %arg2[%c0, %c0_0] : memref<8x64xf32, #tpu.memory_space<vmem>>, vector<8x64xf32>
    %c0_1 = arith.constant 0 : index
    %c0_2 = arith.constant 0 : index
    %1 = vector.load %arg3[%c0_1, %c0_2] : memref<8x32xf32, #tpu.memory_space<vmem>>, vector<8x32xf32>
    %2 = tpu.concatenate %1, %1 in 1 : vector<8x32xf32>, vector<8x32xf32> -> vector<8x64xf32>
    %3 = arith.addf %0, %2 : vector<8x64xf32>
    %c0_3 = arith.constant 0 : index
    %c0_4 = arith.constant 0 : index
    %4 = vector.load %arg4[%c0_3, %c0_4] : memref<8x64xf32, #tpu.memory_space<vmem>>, vector<8x64xf32>
    tpu.vector_store %arg4[%c0_3, %c0_4], %3 {strides = array<i32>} : memref<8x64xf32, #tpu.memory_space<vmem>>, vector<8x64xf32>,
    return
  }
  func.func @transform_0(%arg0: i32) -> i32 {
    %c0_i32 = arith.constant 0 : i32
    %c0_i32_0 = arith.constant 0 : i32
    return %c0_i32 : i32
  }
  func.func @transform_1(%arg0: i32) -> (i32, i32) {
    %c0_i32 = arith.constant 0 : i32
    %c0_i32_0 = arith.constant 0 : i32
    return %arg0, %c0_i32 : i32, i32
  }
  func.func @transform_2(%arg0: i32) -> (i32, i32) {
    %c0_i32 = arith.constant 0 : i32
    %c0_i32_0 = arith.constant 0 : i32
    return %arg0, %c0_i32 : i32, i32
  }
  func.func @transform_3(%arg0: i32) -> (i32, i32) {
    %c0_i32 = arith.constant 0 : i32
    %c0_i32_0 = arith.constant 0 : i32
    return %arg0, %c0_i32 : i32, i32
  }
}

</mosaic_0001>

<bundles_post_ra>
// kernel: tpu_custom_call.1
= control target key start
LH: loop header
LB: loop body
LE: loop exit
PB: predicated region body
PF: predicated region fallthrough
CT: control target
= control target key end

     0   :  { %9 = vsyncpa [#allocation4], 0  ;;  %s188_s0 = inlined_call_operand.<no memory space> [shape: s32[1], index: 0, kind: input, shape index: {}]   ;;  %s189_s1 = inlined_call_operand.hbm [shape: f32[8,64], index: 1, kind: input, shape index: {}]   ;;  %s190_s2 = inlined_call_operand.hbm [shape: f32[8,32], index: 2, kind: input, shape index: {}]   ;;  %s191_s3 = inlined_call_operand.hbm [shape: f32[8,64], index: 3, kind: output, shape index: {}]  }
   0x1   :  { %10 = vsyncpa [#allocation7], 0 }
   0x2   :  { %11 = vsyncpa [#allocation5], 0  ;;  %s19_s14 = sshll.u32 %s189_s1, 4  ;;  %s155_s15 = smov [#allocation3]   ;;  %s20_s14 = int_to_ptr.hbm [resolvable:$true] %s19_s14 }
   0x3   :  { %s21_s16 = sshll.u32 %s155_s15, 4  ;;  %s30_s18 = sshll.u32 %s190_s2, 4  ;;  %s22_s16 = int_to_ptr.vmem [resolvable:$true] %s21_s16  ;;  %s31_s18 = int_to_ptr.hbm [resolvable:$true] %s30_s18 }
   0x4   :  { %24 = dma.hbm_to_vmem [thread:$0]  %s20_s14, 128, %s22_s16, [#allocation4]  }
   0x5   :  { %s156_s19 = smov [#allocation6]  }
   0x6   :  { %s32_s20 = sshll.u32 %s156_s19, 4  ;;  %s33_s20 = int_to_ptr.vmem [resolvable:$true] %s32_s20 }
   0x7   :  { %35 = dma.hbm_to_vmem [thread:$0]  %s31_s18, 128, %s33_s20, [#allocation7]  }
   0x8   :  { %149 = dma.done.wait [#allocation4], 128  }
   0x9   :  { %150 = vsyncadd [#allocation4], 4294967168 }
   0xa   :  { %151 = dma.done.wait [#allocation7], 128  }
   0xb   :  { %152 = vsyncadd [#allocation7], 4294967168  ;;  %v45_v0 = vld [vmem:[#allocation6] sm:$0xff]  ;;  %s157_s1 = smov 32   ;;  %vm50_vm0 = vcmask 261120   ;;  %v44_v1 = vld [vmem:[#allocation3] sm:$0xff] }
   0xc   :  { %47 = vrot.lane.b32.xlu0 %v45_v0, %s157_s1  ;;  %s158_s21 = smov [#allocation8]   ;;  %s62_s2 = sshll.u32 %s191_s3, 4  ;;  %vm53_vm1 = vcmask 523264   ;;  %s63_s2 = int_to_ptr.hbm [resolvable:$true] %s62_s2 }
   0xd   :  { %s60_s22 = sshll.u32 %s158_s21, 4  ;;  %s61_s22 = int_to_ptr.vmem [resolvable:$true] %s60_s22 }
  0x7e   :  { %v48_v2 = vpop.permute.xlu0 %47 }
  0x7f   :  { %v51_v3 = vsel %vm50_vm0, %v45_v0, %v48_v2 }
  0x80   :  { %v52_v4 = vadd.f32 %v51_v3, %v44_v1 }
  0x82   :  { %54 = vst.msk [vmem:[#allocation8] sm:$0xff] %vm53_vm1, %v52_v4 }
  0x83   :  { %65 = dma.vmem_to_hbm [thread:$0]  %s61_s22, 128, %s63_s2, [#allocation5]  }
  0x84   :  { %153 = dma.done.wait [#allocation5], 128  }
  0x85   :  { %154 = vsyncadd [#allocation5], 4294967168 }
  0x86   :  { %70 = vsyncpa [#allocation4], 1 }
  0x87   :  { %71 = vsyncpa [#allocation7], 1 }
  0x88   :  { %72 = vsyncpa [#allocation5], 1 }

</bundles_post_ra>
